<compile_context>
chip_gen: v7x
topology: tpu7x:2x2x1
jax: 0.10.0
libtpu: 0.0.40
codegen_flags: <defaults>
</compile_context>

<pallas_src>
import math

import jax
import jax.numpy as jnp
import numpy as np
from jax.experimental import pallas as pl
from jax.experimental.pallas import tpu as pltpu


# Whole-array, gridless specs (no block_shape, no index_map, no pipeline).
_VMEM = pl.BlockSpec(memory_space=pltpu.MemorySpace.VMEM)
_SMEM = pl.BlockSpec(memory_space=pltpu.MemorySpace.SMEM)


# ----------------------------- Pallas kernels ------------------------------ #
def _mlp_kernel(x_ref, w1_ref, b1_ref, w2_ref, b2_ref, o_ref):
    """out = SiLU(x @ W1 + b1) @ W2 + b2   (f32 on MXU/VPU/EUP)."""
    x = x_ref[...].astype(jnp.float32)
    h = jnp.dot(x, w1_ref[...], preferred_element_type=jnp.float32) + b1_ref[...]
    h = h * jax.nn.sigmoid(h)                       # SiLU
    y = jnp.dot(h, w2_ref[...], preferred_element_type=jnp.float32) + b2_ref[...]
    o_ref[...] = y.astype(o_ref.dtype)


def _affine_kernel(x_ref, w_ref, b_ref, o_ref):
    """out = x @ W + b  (init-time half-table: folds Linear1 into the pe table)."""
    x = x_ref[...].astype(jnp.float32)
    y = jnp.dot(x, w_ref[...], preferred_element_type=jnp.float32) + b_ref[...]
    o_ref[...] = y.astype(o_ref.dtype)


def _fused_gather_mlp_kernel(ts_ref, half_ref, w2_ref, b2_ref, o_ref, x_scr):
    """Per-call fused fallback.

    ts_ref   : SMEM int32[B]            (timesteps)
    half_ref : VMEM f32[L, D]           (pe @ W1 + b1, precomputed)
    out      : SiLU(half[ts]) @ W2 + b2
    """
    B = o_ref.shape[0]
    L = half_ref.shape[0]
    # Scalar-indexed row gather: B unrolled single-row loads, no one-hot / no MXU.
    for b in range(B):                               # B is small & static
        t = jnp.minimum(jnp.maximum(ts_ref[b], 0), L - 1)   # clamp == XLA gather
        x_scr[b:b + 1, :] = half_ref[pl.ds(t, 1), :]
    h = x_scr[...]                                   # already x @ W1 + b1
    h = h * jax.nn.sigmoid(h)                        # SiLU in f32 (EUP)
    y = jnp.dot(h, w2_ref[...], preferred_element_type=jnp.float32) + b2_ref[...]
    o_ref[...] = y.astype(o_ref.dtype)


# ------------------------------ wrappers ----------------------------------- #
def precompute_time_embed_table(pe2d, w1, b1, w2, b2):
    """Init-time: run the time_embed MLP over every pe row: [L, D] -> [L, D]."""
    L, D = pe2d.shape
    ce = pl.CostEstimate(
        flops=2 * 2 * L * D * D + 4 * L * D,
        transcendentals=L * D,
        bytes_accessed=4 * (2 * L * D + 2 * D * D + 2 * D),
    )
    return pl.pallas_call(
        _mlp_kernel,
        out_shape=jax.ShapeDtypeStruct((L, D), pe2d.dtype),
        in_specs=[_VMEM] * 5,
        out_specs=_VMEM,
        cost_estimate=ce,
    )(pe2d, w1, b1, w2, b2)


def precompute_half_table(pe2d, w1, b1):
    """Init-time: half_table = pe @ W1 + b1  (folds Linear1 for the fused path)."""
    L, D = pe2d.shape
    ce = pl.CostEstimate(
        flops=2 * L * D * D + L * D,
        transcendentals=0,
        bytes_accessed=4 * (2 * L * D + D * D + D),
    )
    return pl.pallas_call(
        _affine_kernel,
        out_shape=jax.ShapeDtypeStruct((L, D), pe2d.dtype),
        in_specs=[_VMEM] * 3,
        out_specs=_VMEM,
        cost_estimate=ce,
    )(pe2d, w1, b1)


def timestep_embedder_forward(timesteps, table):
    """Hot path with precomputed table: pure gather, meant to be inlined into
    the consumer's jit region so XLA fuses it with downstream ops."""
    return table[timesteps][:, None, :]              # [B, 1, D]


def timestep_embedder_forward_fused(timesteps, half_table, w2, b2):
    """Single-dispatch fallback: SMEM-timestep gather + SiLU + Linear2 fused."""
    B = timesteps.shape[0]
    L, D = half_table.shape
    ts = timesteps.astype(jnp.int32).reshape(B)
    ce = pl.CostEstimate(
        flops=2 * B * D * D + 5 * B * D,
        transcendentals=B * D,
        bytes_accessed=4 * (B + L * D + D * D + D + B * D),
    )
    y2d = pl.pallas_call(
        _fused_gather_mlp_kernel,
        out_shape=jax.ShapeDtypeStruct((B, D), half_table.dtype),
        in_specs=[_SMEM, _VMEM, _VMEM, _VMEM],
        out_specs=_VMEM,
        scratch_shapes=[pltpu.VMEM((B, D), jnp.float32)],
        cost_estimate=ce,
    )(ts, half_table, w2, b2)
    return y2d.reshape(B, 1, D)                      # [B, 1, D]


# ------------------------- module-level helpers ----------------------------- #
def make_sinusoidal_pe(max_len, d_model):
    """Standard PositionalEncoding buffer: shape [max_len, 1, d_model]."""
    pe = np.zeros((max_len, d_model), dtype=np.float32)
    position = np.arange(0, max_len, dtype=np.float32)[:, None]
    div_term = np.exp(
        np.arange(0, d_model, 2, dtype=np.float32) * (-math.log(10000.0) / d_model)
    )
    pe[:, 0::2] = np.sin(position * div_term)
    pe[:, 1::2] = np.cos(position * div_term)
    return jnp.asarray(pe[:, None, :])  # [max_len, 1, d_model]


# --------------------------------- main ------------------------------------ #
if __name__ == "__main__":
    latent_dim = 32
    max_len = 64
    batch = 8

    key = jax.random.PRNGKey(0)
    k_w1, k_b1, k_w2, k_b2, k_t = jax.random.split(key, 5)

    # Deterministic "nn.Linear"-style params (weights stored as [in, out]).
    bound = 1.0 / math.sqrt(latent_dim)
    w1 = jax.random.uniform(k_w1, (latent_dim, latent_dim), jnp.float32, -bound, bound)
    b1 = jax.random.uniform(k_b1, (1, latent_dim), jnp.float32, -bound, bound)
    w2 = jax.random.uniform(k_w2, (latent_dim, latent_dim), jnp.float32, -bound, bound)
    b2 = jax.random.uniform(k_b2, (1, latent_dim), jnp.float32, -bound, bound)

    pe = make_sinusoidal_pe(max_len, latent_dim)     # [max_len, 1, D]
    pe2d = pe[:, 0, :]                               # [max_len, D] slab for kernels
    timesteps = jax.random.randint(k_t, (batch,), 0, max_len, dtype=jnp.int32)

    # ---- Path 1 (primary): precompute once, forward = jitted gather. ----
    table = jax.block_until_ready(precompute_time_embed_table(pe2d, w1, b1, w2, b2))
    forward_jit = jax.jit(timestep_embedder_forward)  # inlined/fused with consumers
    out_table = jax.block_until_ready(forward_jit(timesteps, table))

    # ---- Path 2 (fallback): half-table fold + fused gather/SiLU/Linear2. ----
    half_table = jax.block_until_ready(precompute_half_table(pe2d, w1, b1))
    out_fused = jax.block_until_ready(
        timestep_embedder_forward_fused(timesteps, half_table, w2, b2)
    )

    # ---- Pure-JAX reference of the original forward semantics. ----
    x_ref = pe[timesteps]                            # [B, 1, D]
    h_ref = x_ref @ w1 + b1
    h_ref = h_ref * jax.nn.sigmoid(h_ref)
    ref = h_ref @ w2 + b2                            # [B, 1, D]

    assert out_table.shape == (batch, 1, latent_dim)
    assert out_fused.shape == (batch, 1, latent_dim)
    np.testing.assert_allclose(np.asarray(out_table), np.asarray(ref),
                               rtol=1e-5, atol=1e-5)
    np.testing.assert_allclose(np.asarray(out_fused), np.asarray(ref),
                               rtol=1e-5, atol=1e-5)

    print("KERNEL_OK")
</pallas_src>

<mosaic_0001>
module attributes {stable_mosaic.version = 11 : i64} {
  func.func @_mlp_kernel(%arg0: memref<64x32xf32, #tpu.memory_space<vmem>>, %arg1: memref<32x32xf32, #tpu.memory_space<vmem>>, %arg2: memref<1x32xf32, #tpu.memory_space<vmem>>, %arg3: memref<32x32xf32, #tpu.memory_space<vmem>>, %arg4: memref<1x32xf32, #tpu.memory_space<vmem>>, %arg5: memref<64x32xf32, #tpu.memory_space<vmem>>) attributes {dimension_semantics = [], scalar_prefetch = 0 : i64, scratch_operands = 0 : i64, tpu.core_type = #tpu.core_type<tc>} {
    %c0 = arith.constant 0 : index
    %c0_0 = arith.constant 0 : index
    %0 = vector.load %arg0[%c0, %c0_0] : memref<64x32xf32, #tpu.memory_space<vmem>>, vector<64x32xf32>
    %c0_1 = arith.constant 0 : index
    %c0_2 = arith.constant 0 : index
    %1 = vector.load %arg1[%c0_1, %c0_2] : memref<32x32xf32, #tpu.memory_space<vmem>>, vector<32x32xf32>
    %cst = arith.constant dense<0.000000e+00> : vector<64x32xf32>
    %2 = tpu.matmul %0, %1, %cst {dimension_numbers = #tpu.dot_dimension_numbers<[1], [0], [0], [1], [0, 0, 1, 1], [], []>} : vector<64x32xf32>, vector<32x32xf32>, vector<64x32xf32> -> vector<64x32xf32>
    %c0_3 = arith.constant 0 : index
    %c0_4 = arith.constant 0 : index
    %3 = vector.load %arg2[%c0_3, %c0_4] : memref<1x32xf32, #tpu.memory_space<vmem>>, vector<1x32xf32>
    %4 = vector.broadcast %3 : vector<1x32xf32> to vector<64x32xf32>
    %5 = arith.addf %2, %4 : vector<64x32xf32>
    %6 = arith.negf %5 : vector<64x32xf32>
    %7 = math.exp %6 : vector<64x32xf32>
    %cst_5 = arith.constant 1.000000e+00 : f32
    %8 = vector.broadcast %cst_5 : f32 to vector<64x32xf32>
    %9 = arith.addf %8, %7 : vector<64x32xf32>
    %10 = arith.divf %8, %9 : vector<64x32xf32>
    %11 = arith.mulf %5, %10 : vector<64x32xf32>
    %c0_6 = arith.constant 0 : index
    %c0_7 = arith.constant 0 : index
    %12 = vector.load %arg3[%c0_6, %c0_7] : memref<32x32xf32, #tpu.memory_space<vmem>>, vector<32x32xf32>
    %cst_8 = arith.constant dense<0.000000e+00> : vector<64x32xf32>
    %13 = tpu.matmul %11, %12, %cst_8 {dimension_numbers = #tpu.dot_dimension_numbers<[1], [0], [0], [1], [0, 0, 1, 1], [], []>} : vector<64x32xf32>, vector<32x32xf32>, vector<64x32xf32> -> vector<64x32xf32>
    %c0_9 = arith.constant 0 : index
    %c0_10 = arith.constant 0 : index
    %14 = vector.load %arg4[%c0_9, %c0_10] : memref<1x32xf32, #tpu.memory_space<vmem>>, vector<1x32xf32>
    %15 = vector.broadcast %14 : vector<1x32xf32> to vector<64x32xf32>
    %16 = arith.addf %13, %15 : vector<64x32xf32>
    %c0_11 = arith.constant 0 : index
    %c0_12 = arith.constant 0 : index
    %17 = vector.load %arg5[%c0_11, %c0_12] : memref<64x32xf32, #tpu.memory_space<vmem>>, vector<64x32xf32>
    tpu.vector_store %arg5[%c0_11, %c0_12], %16 {strides = array<i32>} : memref<64x32xf32, #tpu.memory_space<vmem>>, vector<64x32xf32>,
    return
  }
}

</mosaic_0001>

<bundles_post_ra>
// kernel: tpu_custom_call.1
= control target key start
LH: loop header
LB: loop body
LE: loop exit
PB: predicated region body
PF: predicated region fallthrough
CT: control target
= control target key end

     0   :  { %vm39_vm0 = vcmask 261120   ;;  %s647_s1 = inlined_call_operand.vmem [shape: f32[32,32], index: 1, kind: input, shape index: {}]   ;;  %s648_s0 = inlined_call_operand.vmem [shape: f32[64,32], index: 0, kind: input, shape index: {}]   ;;  %s649_s3 = inlined_call_operand.vmem [shape: f32[32,32], index: 3, kind: input, shape index: {}]   ;;  %s650_s2 = inlined_call_operand.vmem [shape: f32[1,32], index: 2, kind: input, shape index: {}]   ;;  %s651_s4 = inlined_call_operand.vmem [shape: f32[1,32], index: 4, kind: input, shape index: {}]   ;;  %s652_s5 = inlined_call_operand.vmem [shape: f32[64,32], index: 5, kind: output, shape index: {}]  }
   0x1   :  { %v28_v0 = vld [vmem:[%s647_s1] sm:$0xff]  ;;  %v29_v1 = vld [vmem:[%s647_s1 + $0x8] sm:$0xff]  ;;  %v30_v2 = vld [vmem:[%s647_s1 + $0x10] sm:$0xff] }
   0x2   :  { %v467_v3 = vpack.c.bf16 %v29_v1, %v28_v0  ;;  %v31_v4 = vld [vmem:[%s647_s1 + $0x18] sm:$0xff]  ;;  %v20_v5 = vld [vmem:[%s648_s0] sm:$0xff]  ;;  %v21_v7 = vld [vmem:[%s648_s0 + $0x8] sm:$0xff] }
   0x3   :  { %v471_v6 = vpack.c.bf16 %v31_v4, %v30_v2  ;;  %435 = vmatprep.mubr.msk.f32.mxu0 %vm39_vm0, %v20_v5  ;;  %v22_v8 = vld [vmem:[%s648_s0 + $0x10] sm:$0xff]  ;;  %v23_v9 = vld [vmem:[%s648_s0 + $0x18] sm:$0xff]  ;;  %v24_v10 = vld [vmem:[%s648_s0 + $0x20] sm:$0xff] }
   0x4   :  { %468 = vmatprep.subr.bf16.mxu0 %v467_v3  ;;  %v25_v11 = vld [vmem:[%s648_s0 + $0x28] sm:$0xff]  ;;  %v26_v12 = vld [vmem:[%s648_s0 + $0x30] sm:$0xff]  ;;  %v27_v13 = vld [vmem:[%s648_s0 + $0x38] sm:$0xff] }
   0x5   :  { %470 = vmatpush3.bf16.msra.mxu0 %v467_v3  ;;  %v225_v14 = vld [vmem:[%s649_s3] sm:$0xff]  ;;  %v226_v15 = vld [vmem:[%s649_s3 + $0x8] sm:$0xff]  ;;  %v227_v17 = vld [vmem:[%s649_s3 + $0x10] sm:$0xff] }
   0x6   :  { %472 = vmatprep.subr.bf16.mxu0 %v471_v6  ;;  %v475_v16 = vpack.c.bf16 %v226_v15, %v225_v14  ;;  %v228_v18 = vld [vmem:[%s649_s3 + $0x18] sm:$0xff]  ;;  %v377_v20 = vld [vmem:[%s650_s2] ss:$0 sm:$0xff] }
   0x7   :  { %v479_v19 = vpack.c.bf16 %v228_v18, %v227_v17 }
   0x8   :  { %476 = vmatprep.subr.bf16.mxu1 %v475_v16 }
   0x9   :  { %474 = vmatpush3.bf16.msra.mxu0 %v471_v6  ;;  %478 = vmatpush3.bf16.msra.mxu1 %v475_v16 }
   0xa   :  { %480 = vmatprep.subr.bf16.mxu1 %v479_v19 }
   0xc   :  { %436 = vmatmul.mubr.msk.f32.vlgmr.msra.gmra.mrb[0].mxu0 %vm39_vm0, %v21_v7 }
   0xd   :  { %438 = vmatprep.mubr.msk.f32.mxu0 %vm39_vm0, %v22_v8  ;;  %482 = vmatpush3.bf16.msra.mxu1 %v479_v19 }
  0x10   :  { %439 = vmatmul.mubr.msk.f32.gmra.mrb[2].mxu0 %vm39_vm0, %v23_v9 }
  0x11   :  { %441 = vmatprep.mubr.msk.f32.mxu0 %vm39_vm0, %v24_v10 }
  0x14   :  { %442 = vmatmul.mubr.msk.f32.gmra.mrb[4].mxu0 %vm39_vm0, %v25_v11 }
  0x15   :  { %444 = vmatprep.mubr.msk.f32.mxu0 %vm39_vm0, %v26_v12 }
  0x18   :  { %445 = vmatmul.mubr.msk.f32.gmra.mrb[6].mxu0 %vm39_vm0, %v27_v13  ;;  %v394_v13 = vld [vmem:[%s651_s4] ss:$0 sm:$0xff] }
  0xdf   :  { %v437_v21 = vpop.f32.mrb[0].mxu0 }
  0xe0   :  { %v136_v22 = vadd.f32 %v437_v21, %v377_v20  ;;  %v130_v23 = vpop.f32.mrb[1].mxu0 }
  0xe1   :  { %v131_v24 = vadd.f32 %v377_v20, %v130_v23 }
  0xe2   :  { %v387_v25 = vmul.f32 -1.442695, %v136_v22 }
  0xe3   :  { %v386_v26 = vmul.f32 -1.442695, %v131_v24  ;;  %v440_v27 = vpop.f32.mrb[2].mxu0 }
  0xe4   :  { %483 = vpow2.f32 %v387_v25  ;;  %v146_v28 = vadd.f32 %v440_v27, %v377_v20  ;;  %v140_v29 = vpop.f32.mrb[3].mxu0 }
  0xe5   :  { %485 = vpow2.f32 %v386_v26  ;;  %v141_v30 = vadd.f32 %v377_v20, %v140_v29 }
  0xe6   :  { %v389_v31 = vmul.f32 -1.442695, %v146_v28 }
  0xe7   :  { %v388_v32 = vmul.f32 -1.442695, %v141_v30  ;;  %v443_v33 = vpop.f32.mrb[4].mxu0 }
  0xe8   :  { %487 = vpow2.f32 %v389_v31  ;;  %v156_v34 = vadd.f32 %v443_v33, %v377_v20  ;;  %v150_v35 = vpop.f32.mrb[5].mxu0 }
  0xe9   :  { %489 = vpow2.f32 %v388_v32  ;;  %v151_v36 = vadd.f32 %v377_v20, %v150_v35 }
  0xea   :  { %v391_v37 = vmul.f32 -1.442695, %v156_v34 }
  0xeb   :  { %v390_v38 = vmul.f32 -1.442695, %v151_v36  ;;  %v446_v39 = vpop.f32.mrb[6].mxu0 }
  0xec   :  { %491 = vpow2.f32 %v391_v37  ;;  %v166_v40 = vadd.f32 %v446_v39, %v377_v20  ;;  %v160_v41 = vpop.f32.mrb[7].mxu0 }
  0xed   :  { %493 = vpow2.f32 %v390_v38  ;;  %v161_v42 = vadd.f32 %v377_v20, %v160_v41 }
  0xee   :  { %v484_v43 = vpop.eup %483  ;;  %v393_v44 = vmul.f32 -1.442695, %v166_v40 }
  0xef   :  { %v486_v45 = vpop.eup %485  ;;  %v194_v46 = vadd.f32 1.0, %v484_v43  ;;  %v392_v47 = vmul.f32 -1.442695, %v161_v42 }
  0xf0   :  { %v193_v48 = vadd.f32 1.0, %v486_v45  ;;  %495 = vpow2.f32 %v393_v44 }
  0xf1   :  { %497 = vrcp.f32 %v194_v46 }
  0xf2   :  { %v488_v49 = vpop.eup %487  ;;  %499 = vrcp.f32 %v193_v48 }
  0xf3   :  { %v490_v50 = vpop.eup %489  ;;  %v196_v51 = vadd.f32 1.0, %v488_v49  ;;  %501 = vpow2.f32 %v392_v47 }
  0xf4   :  { %v195_v52 = vadd.f32 1.0, %v490_v50 }
  0xf5   :  { %503 = vrcp.f32 %v196_v51 }
  0xf6   :  { %v492_v53 = vpop.eup %491  ;;  %505 = vrcp.f32 %v195_v52 }
  0xf7   :  { %v494_v54 = vpop.eup %493  ;;  %v198_v55 = vadd.f32 1.0, %v492_v53 }
  0xf8   :  { %v197_v56 = vadd.f32 1.0, %v494_v54 }
  0xf9   :  { %507 = vrcp.f32 %v198_v55 }
  0xfa   :  { %v496_v57 = vpop.eup %495  ;;  %509 = vrcp.f32 %v197_v56 }
  0xfb   :  { %v498_v58 = vpop.eup %497  ;;  %v200_v59 = vadd.f32 1.0, %v496_v57 }
  0xfc   :  { %v500_v60 = vpop.eup %499  ;;  %v218_v63 = vmul.f32 %v498_v58, %v136_v22 }
  0xfd   :  { %v502_v61 = vpop.eup %501  ;;  %v217_v62 = vmul.f32 %v500_v60, %v131_v24  ;;  %511 = vrcp.f32 %v200_v59 }
  0xfe   :  { %v199_v0 = vadd.f32 1.0, %v502_v61 }
  0xff   :  { %v504_v1 = vpop.eup %503  ;;  %455 = vmatprep.mubr.msk.f32.mxu1 %vm39_vm0, %v217_v62 }
 0x100   :  { %v506_v2 = vpop.eup %505  ;;  %513 = vrcp.f32 %v199_v0  ;;  %456 = vmatmul.mubr.msk.f32.vlgmr.msra.gmra.mrb[0].mxu1 %vm39_vm0, %v218_v63  ;;  %v220_v4 = vmul.f32 %v504_v1, %v146_v28 }
 0x101   :  { %v219_v3 = vmul.f32 %v506_v2, %v141_v30 }
 0x103   :  { %v508_v5 = vpop.eup %507  ;;  %458 = vmatprep.mubr.msk.f32.mxu1 %vm39_vm0, %v219_v3 }
 0x104   :  { %v510_v6 = vpop.eup %509  ;;  %459 = vmatmul.mubr.msk.f32.gmra.mrb[2].mxu1 %vm39_vm0, %v220_v4  ;;  %v222_v8 = vmul.f32 %v508_v5, %v156_v34 }
 0x105   :  { %v221_v7 = vmul.f32 %v510_v6, %v151_v36 }
 0x107   :  { %461 = vmatprep.mubr.msk.f32.mxu1 %vm39_vm0, %v221_v7  ;;  %v512_v9 = vpop.eup %511 }
 0x108   :  { %462 = vmatmul.mubr.msk.f32.gmra.mrb[4].mxu1 %vm39_vm0, %v222_v8  ;;  %v224_v12 = vmul.f32 %v512_v9, %v166_v40 }
 0x10a   :  { %v514_v10 = vpop.eup %513 }
 0x10b   :  { %v223_v11 = vmul.f32 %v514_v10, %v161_v42 }
 0x10d   :  { %464 = vmatprep.mubr.msk.f32.mxu1 %vm39_vm0, %v223_v11 }
 0x10e   :  { %465 = vmatmul.mubr.msk.f32.gmra.mrb[6].mxu1 %vm39_vm0, %v224_v12 }
 0x1d3   :  { %v457_v14 = vpop.f32.mrb[0].mxu1 }
 0x1d4   :  { %v332_v15 = vadd.f32 %v457_v14, %v394_v13  ;;  %v326_v16 = vpop.f32.mrb[1].mxu1 }
 0x1d5   :  { %v327_v17 = vadd.f32 %v394_v13, %v326_v16 }
 0x1d6   :  { %366 = vst.msk [vmem:[%s652_s5 + $0x8] sm:$0xff] %vm39_vm0, %v332_v15 }
 0x1d7   :  { %365 = vst.msk [vmem:[%s652_s5] sm:$0xff] %vm39_vm0, %v327_v17  ;;  %v460_v18 = vpop.f32.mrb[2].mxu1 }
 0x1d8   :  { %v342_v19 = vadd.f32 %v460_v18, %v394_v13  ;;  %v336_v20 = vpop.f32.mrb[3].mxu1 }
 0x1d9   :  { %v337_v21 = vadd.f32 %v394_v13, %v336_v20 }
 0x1da   :  { %368 = vst.msk [vmem:[%s652_s5 + $0x18] sm:$0xff] %vm39_vm0, %v342_v19 }
 0x1db   :  { %367 = vst.msk [vmem:[%s652_s5 + $0x10] sm:$0xff] %vm39_vm0, %v337_v21  ;;  %v463_v22 = vpop.f32.mrb[4].mxu1 }
 0x1dc   :  { %v352_v23 = vadd.f32 %v463_v22, %v394_v13  ;;  %v346_v24 = vpop.f32.mrb[5].mxu1 }
 0x1dd   :  { %v347_v25 = vadd.f32 %v394_v13, %v346_v24 }
 0x1de   :  { %370 = vst.msk [vmem:[%s652_s5 + $0x28] sm:$0xff] %vm39_vm0, %v352_v23 }
 0x1df   :  { %369 = vst.msk [vmem:[%s652_s5 + $0x20] sm:$0xff] %vm39_vm0, %v347_v25 }
 0x1e1   :  { %v466_v26 = vpop.f32.mrb[6].mxu1 }
 0x1e2   :  { %v362_v27 = vadd.f32 %v466_v26, %v394_v13  ;;  %v356_v28 = vpop.f32.mrb[7].mxu1 }
 0x1e3   :  { %v357_v29 = vadd.f32 %v394_v13, %v356_v28 }
 0x1e4   :  { %372 = vst.msk [vmem:[%s652_s5 + $0x38] sm:$0xff] %vm39_vm0, %v362_v27 }
 0x1e5   :  { %371 = vst.msk [vmem:[%s652_s5 + $0x30] sm:$0xff] %vm39_vm0, %v357_v29 }

</bundles_post_ra>
